<compile_context>
chip_gen: v6e
topology: v6e:2x2x1
jax: 0.10.0
libtpu: 0.0.40
codegen_flags: <defaults>
</compile_context>

<pallas_src>
import jax
import jax.numpy as jnp
from jax.experimental import pallas as pl
from jax.experimental.pallas import tpu as pltpu


def _binary_kernel(x_ref, o_ref):
    x = x_ref[...]
    one = jnp.asarray(1, dtype=x.dtype)
    neg_one = jnp.asarray(-1, dtype=x.dtype)
    # >=0 -> +1 ; <0 -> -1 ; else (NaN) -> passthrough, matching PyTorch masks.
    o_ref[...] = jnp.where(x >= 0, one, jnp.where(x < 0, neg_one, x))


def binary_forward(
    x,
    *,
    target_block_bytes=4 * 1024 * 1024,   # grid-path block size (see header)
    single_block_bytes=1 * 1024 * 1024,   # whole-array fast path threshold
):
    """Elementwise binarize: >=0 -> 1, <0 -> -1 (NaN passes through)."""
    orig_shape = x.shape
    dtype = x.dtype
    n = x.size
    itemsize = jnp.dtype(dtype).itemsize
    # Native sublane packing granularity: f32 -> 8 rows, bf16 -> 16, int8 -> 32.
    sub = 8 * max(1, 4 // itemsize)
    total_bytes = n * itemsize

    # --- pick a lane-dense 2D view (free reshape) when n % 128 == 0 ---------
    lanes = None
    for cand in (4096, 2048, 1024, 512, 256, 128):
        if n % cand == 0 and (n // cand) >= sub:
            lanes = cand
            break
    if lanes is None:
        for cand in (4096, 2048, 1024, 512, 256, 128):
            if n % cand == 0:
                lanes = cand
                break

    # --- tiny inputs: single whole-array block (no grid, no per-step tax) ---
    if total_bytes <= single_block_bytes:
        x_view = x.reshape(n // lanes, lanes) if lanes is not None else x.reshape(n)
        out = pl.pallas_call(
            _binary_kernel,
            out_shape=jax.ShapeDtypeStruct(x_view.shape, dtype),
            input_output_aliases={0: 0},
        )(x_view)
        return out.reshape(orig_shape)

    cparams = pltpu.CompilerParams(dimension_semantics=("parallel",))

    if lanes is not None:
        # --- aligned path: (rows, lanes) slab, big lane-dense blocks ---------
        rows = n // lanes
        x2d = x.reshape(rows, lanes)
        bytes_per_row = lanes * itemsize
        tr = min(rows, max(sub, target_block_bytes // bytes_per_row))
        tr = max(sub, (tr // sub) * sub)
        # Guarantee >= 2 grid steps so both v7x TensorCores stream.
        if rows >= 2 * sub:
            half = max(sub, (rows // 2 // sub) * sub)
            tr = min(tr, half)
        grid = (pl.cdiv(rows, tr),)  # partial last block masked by Pallas

        out2d = pl.pallas_call(
            _binary_kernel,
            out_shape=jax.ShapeDtypeStruct((rows, lanes), dtype),
            grid_spec=pltpu.PrefetchScalarGridSpec(
                num_scalar_prefetch=0,
                grid=grid,
                in_specs=[pl.BlockSpec((tr, lanes), lambda i: (i, 0))],
                out_specs=pl.BlockSpec((tr, lanes), lambda i: (i, 0)),
            ),
            compiler_params=cparams,
            input_output_aliases={0: 0},
        )(x2d)
        return out2d.reshape(orig_shape)

    # --- ragged path: flat 1-D view, cdiv grid masks the partial last block --
    # (No jnp.pad / slice copies: a reshape of a contiguous array is free.)
    flat = x.reshape(n)
    granule = sub * 128  # keep chunks multiples of the (sublane, lane) tile
    elems_per_block = max(granule, (target_block_bytes // itemsize) // granule * granule)
    # Guarantee >= 2 grid steps for mid-sized inputs (v7x dual TC).
    half_elems = max(granule, (n // 2) // granule * granule)
    chunk = min(elems_per_block, half_elems)
    grid = (pl.cdiv(n, chunk),)

    out_flat = pl.pallas_call(
        _binary_kernel,
        out_shape=jax.ShapeDtypeStruct((n,), dtype),
        grid_spec=pltpu.PrefetchScalarGridSpec(
            num_scalar_prefetch=0,
            grid=grid,
            in_specs=[pl.BlockSpec((chunk,), lambda i: (i,))],
            out_specs=pl.BlockSpec((chunk,), lambda i: (i,)),
        ),
        compiler_params=cparams,
        input_output_aliases={0: 0},
    )(flat)
    return out_flat.reshape(orig_shape)


if __name__ == "__main__":
    key = jax.random.PRNGKey(0)
    # Small NCHW input consistent with a conv-style module: (2, 4, 16, 16)
    x = jax.random.normal(key, (2, 4, 16, 16), dtype=jnp.float32)

    out = binary_forward(x)
    out = jax.block_until_ready(out)

    # Reference check (pure JAX) — same semantics as the PyTorch module.
    ref = jnp.where(x >= 0, jnp.float32(1.0),
                    jnp.where(x < 0, jnp.float32(-1.0), x))
    assert out.shape == x.shape and out.dtype == x.dtype
    assert bool(jnp.all(out == ref))

    print("KERNEL_OK")
</pallas_src>

<mosaic_0001>
module attributes {stable_mosaic.version = 11 : i64} {
  func.func @_binary_kernel(%arg0: memref<8x256xf32, #tpu.memory_space<vmem>>, %arg1: memref<8x256xf32, #tpu.memory_space<vmem>>) attributes {dimension_semantics = [], scalar_prefetch = 0 : i64, scratch_operands = 0 : i64, tpu.core_type = #tpu.core_type<tc>} {
    %c0 = arith.constant 0 : index
    %c0_0 = arith.constant 0 : index
    %0 = vector.load %arg0[%c0, %c0_0] : memref<8x256xf32, #tpu.memory_space<vmem>>, vector<8x256xf32>
    %cst = arith.constant 0.000000e+00 : f32
    %1 = vector.broadcast %cst : f32 to vector<8x256xf32>
    %2 = arith.cmpf oge, %0, %1 : vector<8x256xf32>
    %cst_1 = arith.constant 0.000000e+00 : f32
    %3 = vector.broadcast %cst_1 : f32 to vector<8x256xf32>
    %4 = arith.cmpf olt, %0, %3 : vector<8x256xf32>
    %cst_2 = arith.constant -1.000000e+00 : f32
    %5 = vector.broadcast %cst_2 : f32 to vector<8x256xf32>
    %6 = arith.select %4, %5, %0 : vector<8x256xi1>, vector<8x256xf32>
    %cst_3 = arith.constant 1.000000e+00 : f32
    %7 = vector.broadcast %cst_3 : f32 to vector<8x256xf32>
    %8 = arith.select %2, %7, %6 : vector<8x256xi1>, vector<8x256xf32>
    %c0_4 = arith.constant 0 : index
    %c0_5 = arith.constant 0 : index
    %9 = vector.load %arg1[%c0_4, %c0_5] : memref<8x256xf32, #tpu.memory_space<vmem>>, vector<8x256xf32>
    tpu.vector_store %arg1[%c0_4, %c0_5], %8 {strides = array<i32>} : memref<8x256xf32, #tpu.memory_space<vmem>>, vector<8x256xf32>,
    return
  }
}

</mosaic_0001>

<bundles_post_ra>
// kernel: tpu_custom_call.1
= control target key start
LH: loop header
LB: loop body
LE: loop exit
PB: predicated region body
PF: predicated region fallthrough
CT: control target
= control target key end

     0   :  { %6 = vsyncpa [#allocation3], 0  ;;  %s112_s0 = inlined_call_operand.hbm [shape: f32[8,256], index: 0, kind: input, shape index: {}, may-alias: {0,1}]   ;;  %s113_s1 = inlined_call_operand.hbm [shape: f32[8,256], index: 1, kind: output, shape index: {}, may-alias: {0,1}]  }
   0x1   :  { %7 = vsyncpa [#allocation4], 0  ;;  %s94_s6 = smov [#allocation2]  }
   0x2   :  { %s14_s7 = sshll.u32 %s94_s6, 4  ;;  %s15_s7 = int_to_ptr.vmem [resolvable:$true] %s14_s7 }
   0x3   :  { %s58_s8 = scalar_lea.vmem %s15_s7, 256  ;;  %p63_p1 = scmp.lt.s32.totalorder %s15_s7, %s15_s7 }
   0x4   :  { %p59_p0 = scmp.ne.s32.totalorder %s15_s7, %s58_s8  ;;  %p64_p2 = scmp.lt.s32.totalorder %s58_s8, %s58_s8 }
   0x6   :  { %p65_p3 = por %p64_p2, %p63_p1 }
   0x8   :  { %p66_p4 = pnand %p65_p3, %p59_p0 }
   0xa   :  { %69 = shalt.err (!%p66_p4)
}
   0xb   :  { %17 = dma.hbm_to_vmem [thread:$0]  %s112_s0, 256, %s15_s7, [#allocation3]  }
   0xc   :  { %90 = dma.done.wait [#allocation3], 256  }
   0xd   :  { %91 = vsyncadd [#allocation3], 4294967040  ;;  %s95_s11 = smov [#allocation5]   ;;  %v21_v0 = vld [vmem:[#allocation2] sm:$0xff]  ;;  %v22_v1 = vld [vmem:[#allocation2 + $0x8] sm:$0xff] }
   0xe   :  { %s39_s12 = sshll.u32 %s95_s11, 4  ;;  %vm23_vm0 = vcmp.ge.f32.partialorder %v21_v0, 0.0  ;;  %vm25_vm1 = vcmp.lt.f32.partialorder %v21_v0, 0.0  ;;  %vm24_vm2 = vcmp.ge.f32.partialorder %v22_v1, 0.0  ;;  %vm26_vm3 = vcmp.lt.f32.partialorder %v22_v1, 0.0  ;;  %s40_s12 = int_to_ptr.vmem [resolvable:$true] %s39_s12 }
   0xf   :  { %v27_v2 = vsel %vm25_vm1, -1.0, %v21_v0  ;;  %v28_v3 = vsel %vm26_vm3, -1.0, %v22_v1  ;;  %s70_s13 = scalar_lea.vmem %s40_s12, 256  ;;  %p75_p6 = scmp.lt.s32.totalorder %s40_s12, %s40_s12 }
  0x10   :  { %v29_v4 = vsel %vm23_vm0, 1.0, %v27_v2  ;;  %v30_v5 = vsel %vm24_vm2, 1.0, %v28_v3  ;;  %p71_p5 = scmp.ne.s32.totalorder %s40_s12, %s70_s13  ;;  %p76_p7 = scmp.lt.s32.totalorder %s70_s13, %s70_s13 }
  0x11   :  { %31 = vst [vmem:[#allocation5] sm:$0xff] %v29_v4  ;;  %32 = vst [vmem:[#allocation5 + $0x8] sm:$0xff] %v30_v5 }
  0x12   :  { %p77_p8 = por %p76_p7, %p75_p6 }
  0x14   :  { %p78_p9 = pnand %p77_p8, %p71_p5 }
  0x16   :  { %81 = shalt.err (!%p78_p9)
}
  0x17   :  { %42 = dma.vmem_to_hbm [thread:$0]  %s40_s12, 256, %s113_s1, [#allocation4]  }
  0x18   :  { %92 = dma.done.wait [#allocation4], 256  }
  0x19   :  { %93 = vsyncadd [#allocation4], 4294967040 }
  0x1a   :  { %46 = vsyncpa [#allocation3], 1 }
  0x1b   :  { %47 = vsyncpa [#allocation4], 1 }

</bundles_post_ra>
